<compile_context>
chip_gen: v7x
topology: tpu7x:2x2x1
jax: 0.10.0
libtpu: 0.0.40
codegen_flags: <defaults>
</compile_context>

<pallas_src>
import jax
import jax.numpy as jnp
from jax.experimental import pallas as pl
from jax.experimental.pallas import tpu as pltpu

# ---------------- config (small synthetic shapes) ----------------
B = 2          # batch
T = 8          # time steps (h_t / s_t rows)
K = 4          # number of context features in V
H = 32         # hidden_size
A = 32         # decoder_attn_embed_size
BT = B * T
KA = K * A             # 128: lane-dense content_v width (exactly one vreg row)
CW = KA + A            # 160: [content_v | content_s]
OUT_LANES = 128        # packed, lane-dense output width


# =====================================================================
# Fused Atten kernel (single invocation, everything VMEM-resident)
# =====================================================================
def atten_kernel(vflat_ref, h_ref, s_ref, wvbd_ref, whsb_ref, wz_ref, out_ref):
    # vflat_ref [B, K*H]     V rows, flattened per batch element
    # h_ref     [B*T, H]     h_t rows
    # s_ref     [B*T, H]     s_t rows
    # wvbd_ref  [K*H, K*A]   block-diag(wv) -> per-k affine_v outputs, lane-dense
    # whsb_ref  [2H+1, CW]   [[wg_tiled | wg], [0 | ws], [(bv+bg)_tiled | bs+bg]]
    # wz_ref    [CW, K+1]    [[blockdiag(wh) | 0], [0 | wh]]  (bh dropped: softmax-invariant)
    # out_ref   [B*T, 128]   packed: [ c_hat(H) | alpha(K) | beta(1) | 0-pad ]
    h = h_ref[...]                                                     # [BT, H]
    s = s_ref[...]                                                     # [BT, H]
    vflat = vflat_ref[...]                                             # [B, K*H]

    # --- fused projections (biases folded in via the ones column) --------
    ones = jnp.ones((BT, 1), jnp.float32)
    hs1 = jnp.concatenate([h, s, ones], axis=-1)                       # [BT, 2H+1]
    pre = jnp.dot(hs1, whsb_ref[...],
                  preferred_element_type=jnp.float32)                  # [BT, CW]
    #   lanes 0:KA   = affine_g(h) tiled K times + (bv+bg) tiled
    #   lanes KA:CW  = affine_g(h) + affine_s(s) + (bs+bg)

    vA = jnp.dot(vflat, wvbd_ref[...],
                 preferred_element_type=jnp.float32)                   # [B, KA]; block k = V[b,k]@wv
    vA_bcast = jnp.concatenate(
        [jnp.broadcast_to(vA[b:b + 1, :], (T, KA)) for b in range(B)], axis=0)  # [BT, KA]
    vA_pad = jnp.concatenate(
        [vA_bcast, jnp.zeros((BT, A), jnp.float32)], axis=-1)          # [BT, CW]

    content = jnp.tanh(pre + vA_pad)                                   # [BT, CW] = [content_v|content_s]

    # --- every attention logit in one MXU pass ---------------------------
    z5 = jnp.dot(content, wz_ref[...],
                 preferred_element_type=jnp.float32)                   # [BT, K+1]
    z = z5[:, 0:K]                                                     # [BT, K]
    z_ext = z5[:, K:K + 1]                                             # [BT, 1]

    # --- softmax over K -> alpha; extended softmax -> beta ---------------
    z_max = jnp.max(z, axis=-1, keepdims=True)                         # [BT, 1]
    ez = jnp.exp(z - z_max)
    sum_ez = jnp.sum(ez, axis=-1, keepdims=True)
    alpha = ez * pl.reciprocal(sum_ez, approx=True)                    # [BT, K]

    m = jnp.maximum(z_max, z_ext)
    e_ext = jnp.exp(z_ext - m)
    denom = sum_ez * jnp.exp(z_max - m) + e_ext
    beta = e_ext * pl.reciprocal(denom, approx=True)                   # [BT, 1]

    # --- c_t: alpha-weighted sum of V rows (VPU; no MXU round-trip) ------
    ct_blocks = []
    for b in range(B):                                                 # B=2, unrolled
        alpha_b = alpha[b * T:(b + 1) * T]                             # [T, K]
        acc = jnp.zeros((T, H), jnp.float32)
        for k in range(K):
            v_row = vflat[b:b + 1, k * H:(k + 1) * H]                  # [1, H] = V[b, k, :]
            acc = acc + alpha_b[:, k:k + 1] * v_row
        ct_blocks.append(acc)
    c_t = jnp.concatenate(ct_blocks, axis=0)                           # [BT, H]

    c_hat = beta * s + (1.0 - beta) * c_t                              # [BT, H]

    # --- ONE dense, unmasked 128-lane store -------------------------------
    pad = jnp.zeros((BT, OUT_LANES - (H + K + 1)), jnp.float32)
    out_ref[...] = jnp.concatenate([c_hat, alpha, beta, pad], axis=-1)


def _full_spec(a):
    nd = a.ndim
    return pl.BlockSpec(a.shape, lambda i, _nd=nd: (0,) * _nd)


# =====================================================================
# Derived weights: built ONCE at init (hoisted out of the per-call path)
# =====================================================================
def prepare_weights(p):
    wv, bv = p["wv"], p["bv"]
    wg, bg = p["wg"], p["bg"]
    ws, bs = p["ws"], p["bs"]
    wh = p["wh"]
    # NOTE: affine_h's bias bh is intentionally dropped — both softmaxes are
    # invariant to adding a constant to every logit, so it cannot affect outputs.

    wv_bd = jnp.kron(jnp.eye(K, dtype=jnp.float32), wv)                # [K*H, K*A]
    wg_tiled = jnp.tile(wg, (1, K))                                    # [H, K*A]
    b_vg = jnp.tile(bv + bg, (1, K))                                   # [1, K*A]
    b_sg = bs + bg                                                     # [1, A]

    top = jnp.concatenate([wg_tiled, wg], axis=1)                      # [H, CW]
    mid = jnp.concatenate([jnp.zeros((H, KA), jnp.float32), ws], axis=1)   # [H, CW]
    bot = jnp.concatenate([b_vg, b_sg], axis=1)                        # [1, CW]
    w_hsb = jnp.concatenate([top, mid, bot], axis=0)                   # [2H+1, CW]

    wh_bd = jnp.kron(jnp.eye(K, dtype=jnp.float32), wh)                # [K*A, K]
    wz_top = jnp.concatenate([wh_bd, jnp.zeros((KA, 1), jnp.float32)], axis=1)  # [KA, K+1]
    wz_bot = jnp.concatenate([jnp.zeros((A, K), jnp.float32), wh], axis=1)      # [A,  K+1]
    w_z = jnp.concatenate([wz_top, wz_bot], axis=0)                    # [CW, K+1]

    return wv_bd, w_hsb, w_z


def make_atten_forward(params):
    wv_bd, w_hsb, w_z = prepare_weights(params)   # constants, baked into the jit

    @jax.jit
    def fwd(V, h_t, s_t):
        # free bitcast reshapes only — no per-call concats / transposes
        v_flat = V.reshape(B, K * H)
        h_flat = h_t.reshape(BT, H)
        s_flat = s_t.reshape(BT, H)
        ins = (v_flat, h_flat, s_flat, wv_bd, w_hsb, w_z)
        packed = pl.pallas_call(
            atten_kernel,
            grid=(1,),
            in_specs=[_full_spec(a) for a in ins],
            out_specs=pl.BlockSpec((BT, OUT_LANES), lambda i: (0, 0)),
            out_shape=jax.ShapeDtypeStruct((BT, OUT_LANES), jnp.float32),
            compiler_params=pltpu.CompilerParams(
                dimension_semantics=("arbitrary",)),
        )(*ins)
        c_hat = packed[:, :H].reshape(B, T, H)
        alpha = packed[:, H:H + K].reshape(B, T, K)
        beta = packed[:, H + K:H + K + 1].reshape(B, T, 1)
        return c_hat, alpha, beta

    return fwd


# =====================================================================
# Pure-JAX reference (mirrors the PyTorch Atten.forward, dropout = identity)
# =====================================================================
def atten_reference(V, h_t, s_t, p):
    lin = lambda x, w, b: jnp.dot(x, w) + b
    content_v = (lin(V, p["wv"], p["bv"])[:, None, :, :]
                 + lin(h_t, p["wg"], p["bg"])[:, :, None, :])            # [B,T,K,A]
    z = jnp.squeeze(jnp.dot(jnp.tanh(content_v), p["wh"]), -1) + p["bh"][0, 0]  # [B,T,K]
    alpha = jax.nn.softmax(z, axis=-1)
    c_t = jnp.einsum('btk,bkh->bth', alpha, V)
    content_s = lin(s_t, p["ws"], p["bs"]) + lin(h_t, p["wg"], p["bg"])
    z_ext = jnp.dot(jnp.tanh(content_s), p["wh"]) + p["bh"]              # [B,T,1]
    ext = jnp.concatenate([z, z_ext], axis=-1)
    beta = jax.nn.softmax(ext, axis=-1)[:, :, -1:]
    c_hat = beta * s_t + (1.0 - beta) * c_t
    return c_hat, alpha, beta


# =====================================================================
# Deterministic synthetic parameters (no checkpoint loading)
# =====================================================================
def init_params(key):
    ks = jax.random.split(key, 8)
    nrm = lambda k, shape: 0.1 * jax.random.normal(k, shape, jnp.float32)
    return {
        "wv": nrm(ks[0], (H, A)), "bv": nrm(ks[1], (1, A)),   # affine_v
        "wg": nrm(ks[2], (H, A)), "bg": nrm(ks[3], (1, A)),   # affine_g
        "ws": nrm(ks[4], (H, A)), "bs": nrm(ks[5], (1, A)),   # affine_s
        "wh": nrm(ks[6], (A, 1)), "bh": nrm(ks[7], (1, 1)),   # affine_h
    }


if __name__ == "__main__":
    key = jax.random.PRNGKey(0)
    k_v, k_h, k_s, k_p = jax.random.split(key, 4)

    V = jax.random.normal(k_v, (B, K, H), jnp.float32)
    h_t = jax.random.normal(k_h, (B, T, H), jnp.float32)
    s_t = jax.random.normal(k_s, (B, T, H), jnp.float32)
    params = init_params(k_p)

    atten_forward = make_atten_forward(params)
    c_hat, alpha, beta = atten_forward(V, h_t, s_t)
    jax.block_until_ready((c_hat, alpha, beta))

    assert c_hat.shape == (B, T, H)
    assert alpha.shape == (B, T, K)
    assert beta.shape == (B, T, 1)
    assert bool(jnp.all(jnp.isfinite(c_hat)))
    assert bool(jnp.all(jnp.isfinite(alpha)))
    assert bool(jnp.all(jnp.isfinite(beta)))

    c_ref, a_ref, b_ref = atten_reference(V, h_t, s_t, params)
    assert bool(jnp.allclose(c_hat, c_ref, atol=1e-2, rtol=1e-2))
    assert bool(jnp.allclose(alpha, a_ref, atol=1e-2, rtol=1e-2))
    assert bool(jnp.allclose(beta, b_ref, atol=1e-2, rtol=1e-2))

    print("KERNEL_OK")
</pallas_src>

<mosaic_0001>
module attributes {stable_mosaic.version = 11 : i64} {
  func.func @atten_kernel(%arg0: i32, %arg1: memref<2x128xf32, #tpu.memory_space<vmem>>, %arg2: memref<16x32xf32, #tpu.memory_space<vmem>>, %arg3: memref<16x32xf32, #tpu.memory_space<vmem>>, %arg4: memref<128x128xf32, #tpu.memory_space<vmem>>, %arg5: memref<65x160xf32, #tpu.memory_space<vmem>>, %arg6: memref<160x5xf32, #tpu.memory_space<vmem>>, %arg7: memref<16x128xf32, #tpu.memory_space<vmem>>) attributes {dimension_semantics = [#tpu.dimension_semantics<arbitrary>], iteration_bounds = array<i64: 1>, scalar_prefetch = 0 : i64, scratch_operands = 0 : i64, tpu.core_type = #tpu.core_type<tc>, window_params = [{pipeline_mode = #tpu.pipeline_mode<synchronous>, transform_indices = @transform_0, window_bounds = array<i64: 2, 128>}, {pipeline_mode = #tpu.pipeline_mode<synchronous>, transform_indices = @transform_1, window_bounds = array<i64: 16, 32>}, {pipeline_mode = #tpu.pipeline_mode<synchronous>, transform_indices = @transform_2, window_bounds = array<i64: 16, 32>}, {pipeline_mode = #tpu.pipeline_mode<synchronous>, transform_indices = @transform_3, window_bounds = array<i64: 128, 128>}, {pipeline_mode = #tpu.pipeline_mode<synchronous>, transform_indices = @transform_4, window_bounds = array<i64: 65, 160>}, {pipeline_mode = #tpu.pipeline_mode<synchronous>, transform_indices = @transform_5, window_bounds = array<i64: 160, 5>}, {pipeline_mode = #tpu.pipeline_mode<synchronous>, transform_indices = @transform_6, window_bounds = array<i64: 16, 128>}]} {
    %c0 = arith.constant 0 : index
    %c0_0 = arith.constant 0 : index
    %0 = vector.load %arg2[%c0, %c0_0] : memref<16x32xf32, #tpu.memory_space<vmem>>, vector<16x32xf32>
    %c0_1 = arith.constant 0 : index
    %c0_2 = arith.constant 0 : index
    %1 = vector.load %arg3[%c0_1, %c0_2] : memref<16x32xf32, #tpu.memory_space<vmem>>, vector<16x32xf32>
    %c0_3 = arith.constant 0 : index
    %c0_4 = arith.constant 0 : index
    %2 = vector.load %arg1[%c0_3, %c0_4] : memref<2x128xf32, #tpu.memory_space<vmem>>, vector<2x128xf32>
    %cst = arith.constant 1.000000e+00 : f32
    %3 = vector.broadcast %cst : f32 to vector<16x1xf32>
    %4 = tpu.concatenate %0, %1, %3 in 1 : vector<16x32xf32>, vector<16x32xf32>, vector<16x1xf32> -> vector<16x65xf32>
    %c0_5 = arith.constant 0 : index
    %c0_6 = arith.constant 0 : index
    %5 = vector.load %arg5[%c0_5, %c0_6] : memref<65x160xf32, #tpu.memory_space<vmem>>, vector<65x160xf32>
    %cst_7 = arith.constant dense<0.000000e+00> : vector<16x160xf32>
    %6 = tpu.matmul %4, %5, %cst_7 {dimension_numbers = #tpu.dot_dimension_numbers<[1], [0], [0], [1], [0, 0, 1, 1], [], []>} : vector<16x65xf32>, vector<65x160xf32>, vector<16x160xf32> -> vector<16x160xf32>
    %c0_8 = arith.constant 0 : index
    %c0_9 = arith.constant 0 : index
    %7 = vector.load %arg4[%c0_8, %c0_9] : memref<128x128xf32, #tpu.memory_space<vmem>>, vector<128x128xf32>
    %cst_10 = arith.constant dense<0.000000e+00> : vector<2x128xf32>
    %8 = tpu.matmul %2, %7, %cst_10 {dimension_numbers = #tpu.dot_dimension_numbers<[1], [0], [0], [1], [0, 0, 1, 1], [], []>} : vector<2x128xf32>, vector<128x128xf32>, vector<2x128xf32> -> vector<2x128xf32>
    %9 = vector.extract_strided_slice %8 {offsets = [0, 0], sizes = [1, 128], strides = [1, 1]} : vector<2x128xf32> to vector<1x128xf32>
    %10 = vector.shape_cast %9 : vector<1x128xf32> to vector<1x128xf32>
    %11 = vector.broadcast %10 : vector<1x128xf32> to vector<8x128xf32>
    %12 = vector.extract_strided_slice %8 {offsets = [1, 0], sizes = [1, 128], strides = [1, 1]} : vector<2x128xf32> to vector<1x128xf32>
    %13 = vector.shape_cast %12 : vector<1x128xf32> to vector<1x128xf32>
    %14 = vector.broadcast %13 : vector<1x128xf32> to vector<8x128xf32>
    %15 = tpu.concatenate %11, %14 in 0 : vector<8x128xf32>, vector<8x128xf32> -> vector<16x128xf32>
    %cst_11 = arith.constant 0.000000e+00 : f32
    %16 = vector.broadcast %cst_11 : f32 to vector<16x32xf32>
    %17 = tpu.concatenate %15, %16 in 1 : vector<16x128xf32>, vector<16x32xf32> -> vector<16x160xf32>
    %18 = arith.addf %6, %17 : vector<16x160xf32>
    %19 = math.tanh %18 : vector<16x160xf32>
    %c0_12 = arith.constant 0 : index
    %c0_13 = arith.constant 0 : index
    %20 = vector.load %arg6[%c0_12, %c0_13] : memref<160x5xf32, #tpu.memory_space<vmem>>, vector<160x5xf32>
    %cst_14 = arith.constant dense<0.000000e+00> : vector<16x5xf32>
    %21 = tpu.matmul %19, %20, %cst_14 {dimension_numbers = #tpu.dot_dimension_numbers<[1], [0], [0], [1], [0, 0, 1, 1], [], []>} : vector<16x160xf32>, vector<160x5xf32>, vector<16x5xf32> -> vector<16x5xf32>
    %22 = vector.extract_strided_slice %21 {offsets = [0, 0], sizes = [16, 4], strides = [1, 1]} : vector<16x5xf32> to vector<16x4xf32>
    %23 = vector.extract_strided_slice %21 {offsets = [0, 4], sizes = [16, 1], strides = [1, 1]} : vector<16x5xf32> to vector<16x1xf32>
    %cst_15 = arith.constant dense<0xFF800000> : vector<16xf32>
    %24 = vector.multi_reduction <maximumf>, %22, %cst_15 [1] : vector<16x4xf32> to vector<16xf32>
    %25 = vector.shape_cast %24 : vector<16xf32> to vector<16x1xf32>
    %26 = vector.broadcast %25 : vector<16x1xf32> to vector<16x4xf32>
    %27 = arith.subf %22, %26 : vector<16x4xf32>
    %28 = math.exp %27 : vector<16x4xf32>
    %cst_16 = arith.constant dense<0.000000e+00> : vector<16xf32>
    %29 = vector.multi_reduction <add>, %28, %cst_16 [1] : vector<16x4xf32> to vector<16xf32>
    %30 = vector.shape_cast %29 : vector<16xf32> to vector<16x1xf32>
    %31 = tpu.reciprocal %30 {approx = true} : vector<16x1xf32> -> vector<16x1xf32>
    %32 = vector.broadcast %31 : vector<16x1xf32> to vector<16x4xf32>
    %33 = arith.mulf %28, %32 : vector<16x4xf32>
    %34 = arith.maximumf %25, %23 : vector<16x1xf32>
    %35 = arith.subf %23, %34 : vector<16x1xf32>
    %36 = math.exp %35 : vector<16x1xf32>
    %37 = arith.subf %25, %34 : vector<16x1xf32>
    %38 = math.exp %37 : vector<16x1xf32>
    %39 = arith.mulf %30, %38 : vector<16x1xf32>
    %40 = arith.addf %39, %36 : vector<16x1xf32>
    %41 = tpu.reciprocal %40 {approx = true} : vector<16x1xf32> -> vector<16x1xf32>
    %42 = arith.mulf %36, %41 : vector<16x1xf32>
    %43 = vector.extract_strided_slice %33 {offsets = [0, 0], sizes = [8, 4], strides = [1, 1]} : vector<16x4xf32> to vector<8x4xf32>
    %cst_17 = arith.constant 0.000000e+00 : f32
    %44 = vector.broadcast %cst_17 : f32 to vector<8x32xf32>
    %45 = vector.extract_strided_slice %2 {offsets = [0, 0], sizes = [1, 32], strides = [1, 1]} : vector<2x128xf32> to vector<1x32xf32>
    %46 = vector.extract_strided_slice %43 {offsets = [0, 0], sizes = [8, 1], strides = [1, 1]} : vector<8x4xf32> to vector<8x1xf32>
    %47 = vector.broadcast %46 : vector<8x1xf32> to vector<8x32xf32>
    %48 = vector.broadcast %45 : vector<1x32xf32> to vector<8x32xf32>
    %49 = arith.mulf %47, %48 : vector<8x32xf32>
    %50 = arith.addf %44, %49 : vector<8x32xf32>
    %51 = vector.extract_strided_slice %2 {offsets = [0, 32], sizes = [1, 32], strides = [1, 1]} : vector<2x128xf32> to vector<1x32xf32>
    %52 = vector.extract_strided_slice %43 {offsets = [0, 1], sizes = [8, 1], strides = [1, 1]} : vector<8x4xf32> to vector<8x1xf32>
    %53 = vector.broadcast %52 : vector<8x1xf32> to vector<8x32xf32>
    %54 = vector.broadcast %51 : vector<1x32xf32> to vector<8x32xf32>
    %55 = arith.mulf %53, %54 : vector<8x32xf32>
    %56 = arith.addf %50, %55 : vector<8x32xf32>
    %57 = vector.extract_strided_slice %2 {offsets = [0, 64], sizes = [1, 32], strides = [1, 1]} : vector<2x128xf32> to vector<1x32xf32>
    %58 = vector.extract_strided_slice %43 {offsets = [0, 2], sizes = [8, 1], strides = [1, 1]} : vector<8x4xf32> to vector<8x1xf32>
    %59 = vector.broadcast %58 : vector<8x1xf32> to vector<8x32xf32>
    %60 = vector.broadcast %57 : vector<1x32xf32> to vector<8x32xf32>
    %61 = arith.mulf %59, %60 : vector<8x32xf32>
    %62 = arith.addf %56, %61 : vector<8x32xf32>
    %63 = vector.extract_strided_slice %2 {offsets = [0, 96], sizes = [1, 32], strides = [1, 1]} : vector<2x128xf32> to vector<1x32xf32>
    %64 = vector.extract_strided_slice %43 {offsets = [0, 3], sizes = [8, 1], strides = [1, 1]} : vector<8x4xf32> to vector<8x1xf32>
    %65 = vector.broadcast %64 : vector<8x1xf32> to vector<8x32xf32>
    %66 = vector.broadcast %63 : vector<1x32xf32> to vector<8x32xf32>
    %67 = arith.mulf %65, %66 : vector<8x32xf32>
    %68 = arith.addf %62, %67 : vector<8x32xf32>
    %69 = vector.extract_strided_slice %33 {offsets = [8, 0], sizes = [8, 4], strides = [1, 1]} : vector<16x4xf32> to vector<8x4xf32>
    %cst_18 = arith.constant 0.000000e+00 : f32
    %70 = vector.broadcast %cst_18 : f32 to vector<8x32xf32>
    %71 = vector.extract_strided_slice %2 {offsets = [1, 0], sizes = [1, 32], strides = [1, 1]} : vector<2x128xf32> to vector<1x32xf32>
    %72 = vector.extract_strided_slice %69 {offsets = [0, 0], sizes = [8, 1], strides = [1, 1]} : vector<8x4xf32> to vector<8x1xf32>
    %73 = vector.broadcast %72 : vector<8x1xf32> to vector<8x32xf32>
    %74 = vector.broadcast %71 : vector<1x32xf32> to vector<8x32xf32>
    %75 = arith.mulf %73, %74 : vector<8x32xf32>
    %76 = arith.addf %70, %75 : vector<8x32xf32>
    %77 = vector.extract_strided_slice %2 {offsets = [1, 32], sizes = [1, 32], strides = [1, 1]} : vector<2x128xf32> to vector<1x32xf32>
    %78 = vector.extract_strided_slice %69 {offsets = [0, 1], sizes = [8, 1], strides = [1, 1]} : vector<8x4xf32> to vector<8x1xf32>
    %79 = vector.broadcast %78 : vector<8x1xf32> to vector<8x32xf32>
    %80 = vector.broadcast %77 : vector<1x32xf32> to vector<8x32xf32>
    %81 = arith.mulf %79, %80 : vector<8x32xf32>
    %82 = arith.addf %76, %81 : vector<8x32xf32>
    %83 = vector.extract_strided_slice %2 {offsets = [1, 64], sizes = [1, 32], strides = [1, 1]} : vector<2x128xf32> to vector<1x32xf32>
    %84 = vector.extract_strided_slice %69 {offsets = [0, 2], sizes = [8, 1], strides = [1, 1]} : vector<8x4xf32> to vector<8x1xf32>
    %85 = vector.broadcast %84 : vector<8x1xf32> to vector<8x32xf32>
    %86 = vector.broadcast %83 : vector<1x32xf32> to vector<8x32xf32>
    %87 = arith.mulf %85, %86 : vector<8x32xf32>
    %88 = arith.addf %82, %87 : vector<8x32xf32>
    %89 = vector.extract_strided_slice %2 {offsets = [1, 96], sizes = [1, 32], strides = [1, 1]} : vector<2x128xf32> to vector<1x32xf32>
    %90 = vector.extract_strided_slice %69 {offsets = [0, 3], sizes = [8, 1], strides = [1, 1]} : vector<8x4xf32> to vector<8x1xf32>
    %91 = vector.broadcast %90 : vector<8x1xf32> to vector<8x32xf32>
    %92 = vector.broadcast %89 : vector<1x32xf32> to vector<8x32xf32>
    %93 = arith.mulf %91, %92 : vector<8x32xf32>
    %94 = arith.addf %88, %93 : vector<8x32xf32>
    %95 = tpu.concatenate %68, %94 in 0 : vector<8x32xf32>, vector<8x32xf32> -> vector<16x32xf32>
    %96 = vector.broadcast %42 : vector<16x1xf32> to vector<16x32xf32>
    %97 = arith.mulf %96, %1 : vector<16x32xf32>
    %cst_19 = arith.constant 1.000000e+00 : f32
    %98 = vector.broadcast %cst_19 : f32 to vector<16x1xf32>
    %99 = arith.subf %98, %42 : vector<16x1xf32>
    %100 = vector.broadcast %99 : vector<16x1xf32> to vector<16x32xf32>
    %101 = arith.mulf %100, %95 : vector<16x32xf32>
    %102 = arith.addf %97, %101 : vector<16x32xf32>
    %cst_20 = arith.constant 0.000000e+00 : f32
    %103 = vector.broadcast %cst_20 : f32 to vector<16x91xf32>
    %104 = tpu.concatenate %102, %33, %42, %103 in 1 : vector<16x32xf32>, vector<16x4xf32>, vector<16x1xf32>, vector<16x91xf32> -> vector<16x128xf32>
    %c0_21 = arith.constant 0 : index
    %c0_22 = arith.constant 0 : index
    %105 = vector.load %arg7[%c0_21, %c0_22] : memref<16x128xf32, #tpu.memory_space<vmem>>, vector<16x128xf32>
    tpu.vector_store %arg7[%c0_21, %c0_22], %104 {strides = array<i32>} : memref<16x128xf32, #tpu.memory_space<vmem>>, vector<16x128xf32>,
    return
  }
  func.func @transform_0(%arg0: i32) -> (i32, i32) {
    %c0_i32 = arith.constant 0 : i32
    %c0_i32_0 = arith.constant 0 : i32
    %c0_i32_1 = arith.constant 0 : i32
    return %c0_i32, %c0_i32_0 : i32, i32
  }
  func.func @transform_1(%arg0: i32) -> (i32, i32) {
    %c0_i32 = arith.constant 0 : i32
    %c0_i32_0 = arith.constant 0 : i32
    %c0_i32_1 = arith.constant 0 : i32
    return %c0_i32, %c0_i32_0 : i32, i32
  }
  func.func @transform_2(%arg0: i32) -> (i32, i32) {
    %c0_i32 = arith.constant 0 : i32
    %c0_i32_0 = arith.constant 0 : i32
    %c0_i32_1 = arith.constant 0 : i32
    return %c0_i32, %c0_i32_0 : i32, i32
  }
  func.func @transform_3(%arg0: i32) -> (i32, i32) {
    %c0_i32 = arith.constant 0 : i32
    %c0_i32_0 = arith.constant 0 : i32
    %c0_i32_1 = arith.constant 0 : i32
    return %c0_i32, %c0_i32_0 : i32, i32
  }
  func.func @transform_4(%arg0: i32) -> (i32, i32) {
    %c0_i32 = arith.constant 0 : i32
    %c0_i32_0 = arith.constant 0 : i32
    %c0_i32_1 = arith.constant 0 : i32
    return %c0_i32, %c0_i32_0 : i32, i32
  }
  func.func @transform_5(%arg0: i32) -> (i32, i32) {
    %c0_i32 = arith.constant 0 : i32
    %c0_i32_0 = arith.constant 0 : i32
    %c0_i32_1 = arith.constant 0 : i32
    return %c0_i32, %c0_i32_0 : i32, i32
  }
  func.func @transform_6(%arg0: i32) -> (i32, i32) {
    %c0_i32 = arith.constant 0 : i32
    %c0_i32_0 = arith.constant 0 : i32
    %c0_i32_1 = arith.constant 0 : i32
    return %c0_i32, %c0_i32_0 : i32, i32
  }
}

</mosaic_0001>

<bundles_post_ra>
// kernel: fwd.1
= control target key start
LH: loop header
LB: loop body
LE: loop exit
PB: predicated region body
PF: predicated region fallthrough
CT: control target
= control target key end

     0   :  { %11 = vsyncpa [#allocation3], 0  ;;  %s1068_s0 = inlined_call_operand.vmem [shape: f32[2,128], index: 0, kind: input, shape index: {}]   ;;  %s1069_s1 = inlined_call_operand.vmem [shape: f32[16,32], index: 1, kind: input, shape index: {}]   ;;  %s1070_s2 = inlined_call_operand.hbm [shape: f32[16,32], index: 2, kind: input, shape index: {}]   ;;  %s1071_s3 = inlined_call_operand.hbm [shape: f32[128,128], index: 3, kind: input, shape index: {}]   ;;  %s1072_s4 = inlined_call_operand.hbm [shape: f32[65,160], index: 4, kind: input, shape index: {}]   ;;  %s1073_s5 = inlined_call_operand.hbm [shape: f32[160,5], index: 5, kind: input, shape index: {}]   ;;  %s1074_s6 = inlined_call_operand.vmem [shape: f32[16,128], index: 6, kind: output, shape index: {}]  }
   0x1   :  { %12 = vsyncpa [#allocation5], 0 }
   0x2   :  { %13 = vsyncpa [#allocation8], 0  ;;  %s867_s21 = smov [#allocation4]   ;;  %s868_s23 = smov [#allocation2]  }
   0x3   :  { %s35_s22 = sshll.u32 %s867_s21, 4  ;;  %s23_s24 = sshll.u32 %s868_s23, 4  ;;  %s36_s22 = int_to_ptr.vmem [resolvable:$true] %s35_s22  ;;  %s921_s24 = int_to_ptr.vmem [resolvable:$true] %s23_s24 }
   0x4   :  { %s773_s27 = scalar_lea.hbm %s1071_s3, 2048 }
   0x5   :  { %p774_p0 = scmp.ne.s32.totalorder %s1071_s3, %s773_s27  ;;  %p777_p1 = scmp.lt.u32.totalorder %s773_s27, %s1071_s3 }
   0x7   :  { %p779_p2 = pnand %p777_p1, %p774_p0 }
   0x9   :  { %782 = shalt.err (!%p779_p2)
}
   0xa   :  { %s783_s8 = scalar_lea.vmem %s36_s22, 2048  ;;  %p788_p4 = scmp.lt.s32.totalorder %s36_s22, %s36_s22 }
   0xb   :  { %p784_p3 = scmp.ne.s32.totalorder %s36_s22, %s783_s8  ;;  %p789_p5 = scmp.lt.s32.totalorder %s783_s8, %s783_s8 }
   0xd   :  { %p790_p6 = por %p789_p5, %p788_p4 }
   0xf   :  { %p791_p7 = pnand %p790_p6, %p784_p3 }
  0x11   :  { %794 = shalt.err (!%p791_p7)
}
  0x12   :  { %s869_s9 = smov 128   ;;  %s870_s10 = smov 8  }
  0x13   :  { %41 = dma.hbm_to_vmem [thread:$0]  %s1071_s3, 2048, %s36_s22, [#allocation5], %s869_s9, %s869_s9, %s870_s10  }
  0x14   :  { %s795_s15 = scalar_lea.hbm %s1070_s2, 256 }
  0x15   :  { %p796_p8 = scmp.ne.s32.totalorder %s1070_s2, %s795_s15  ;;  %p799_p9 = scmp.lt.u32.totalorder %s795_s15, %s1070_s2 }
  0x17   :  { %p801_p10 = pnand %p799_p9, %p796_p8 }
  0x19   :  { %804 = shalt.err (!%p801_p10)
}
  0x1a   :  { %s805_s20 = scalar_lea.vmem %s921_s24, 256  ;;  %p810_p12 = scmp.lt.s32.totalorder %s921_s24, %s921_s24 }
  0x1b   :  { %p806_p11 = scmp.ne.s32.totalorder %s921_s24, %s805_s20  ;;  %p811_p13 = scmp.lt.s32.totalorder %s805_s20, %s805_s20 }
  0x1d   :  { %p812_p0 = por %p811_p13, %p810_p12 }
  0x1f   :  { %p813_p1 = pnand %p812_p0, %p806_p11 }
  0x21   :  { %816 = shalt.err (!%p813_p1)
}
  0x22   :  { %29 = dma.hbm_to_vmem [thread:$0]  %s1070_s2, 256, %s921_s24, [#allocation3], %s869_s9, %s869_s9, %s870_s10  }
  0x23   :  { %s871_s22 = smov [#allocation6]   ;;  %s817_s27 = scalar_lea.hbm %s1072_s4, 2304 }
  0x24   :  { %s47_s23 = sshll.u32 %s871_s22, 4  ;;  %p818_p2 = scmp.ne.s32.totalorder %s1072_s4, %s817_s27  ;;  %s48_s23 = int_to_ptr.vmem [resolvable:$true] %s47_s23 }
  0x25   :  { %p821_p3 = scmp.lt.u32.totalorder %s817_s27, %s1072_s4 }
  0x27   :  { %p823_p4 = pnand %p821_p3, %p818_p2 }
  0x29   :  { %826 = shalt.err (!%p823_p4)
}
  0x2a   :  { %s827_s8 = scalar_lea.vmem %s48_s23, 2304  ;;  %p832_p6 = scmp.lt.s32.totalorder %s48_s23, %s48_s23 }
  0x2b   :  { %p828_p5 = scmp.ne.s32.totalorder %s48_s23, %s827_s8  ;;  %p833_p7 = scmp.lt.s32.totalorder %s827_s8, %s827_s8 }
  0x2d   :  { %p834_p8 = por %p833_p7, %p832_p6 }
  0x2f   :  { %p835_p9 = pnand %p834_p8, %p828_p5 }
  0x31   :  { %838 = shalt.err (!%p835_p9)
}
  0x32   :  { %s872_s2 = smov 256   ;;  %s873_s24 = smov 16  }
  0x33   :  { %53 = dma.hbm_to_vmem [thread:$0]  %s1072_s4, 2304, %s48_s23, [#allocation5], %s872_s2, %s872_s2, %s873_s24  }
  0x34   :  { %s874_s13 = smov [#allocation7]   ;;  %s839_s17 = scalar_lea.hbm %s1073_s5, 2560 }
  0x35   :  { %s59_s14 = sshll.u32 %s874_s13, 4  ;;  %p840_p10 = scmp.ne.s32.totalorder %s1073_s5, %s839_s17  ;;  %s60_s14 = int_to_ptr.vmem [resolvable:$true] %s59_s14 }
  0x36   :  { %p843_p11 = scmp.lt.u32.totalorder %s839_s17, %s1073_s5 }
  0x38   :  { %p845_p12 = pnand %p843_p11, %p840_p10 }
  0x3a   :  { %848 = shalt.err (!%p845_p12)
}
  0x3b   :  { %s849_s21 = scalar_lea.vmem %s60_s14, 2560  ;;  %p854_p0 = scmp.lt.s32.totalorder %s60_s14, %s60_s14 }
  0x3c   :  { %p850_p13 = scmp.ne.s32.totalorder %s60_s14, %s849_s21  ;;  %p855_p1 = scmp.lt.s32.totalorder %s849_s21, %s849_s21 }
  0x3e   :  { %p856_p2 = por %p855_p1, %p854_p0 }
  0x40   :  { %p857_p3 = pnand %p856_p2, %p850_p13 }
  0x42   :  { %860 = shalt.err (!%p857_p3)
}
  0x43   :  { %65 = dma.hbm_to_vmem [thread:$0]  %s1073_s5, 2560, %s60_s14, [#allocation8], %s869_s9, %s869_s9, %s870_s10  }
  0x44   :  { %861 = dma.done.wait [#allocation3], 256  }
  0x45   :  { %862 = vsyncadd [#allocation3], 4294967040 }
  0x46   :  { %863 = dma.done.wait [#allocation5], 4352  }
  0x47   :  { %864 = vsyncadd [#allocation5], 4294962944 }
  0x48   :  { %865 = dma.done.wait [#allocation8], 2560  }
  0x49   :  { %866 = vsyncadd [#allocation8], 4294964736  ;;  %v875_v0 = vmov 0.0|0.0   ;;  %vm876_vm0 = vmmov 0   ;;  %v877_v1 = vmov 0.0   ;;  %v988_v2 = vld [vmem:[#allocation2] sm:$0xff] }
  0x4a   :  { %647 = vmatprep.subr.bf16.mxu0 %v875_v0  ;;  %644 = vmatprep.mubr.msk.f32.mxu0 %vm876_vm0, %v877_v1  ;;  %v115_v3 = vld [vmem:[#allocation4] sm:$0xff]  ;;  %s878_s23 = smov 32   ;;  %v116_v4 = vld [vmem:[#allocation4 + $0x8] sm:$0xff]  ;;  %v117_v5 = vld [vmem:[#allocation4 + $0x10] sm:$0xff]  ;;  %vm216_vm1 = vcmask 1040384   ;;  %vm91_vm2 = vcmask 261120  }
  0x4b   :  { %687 = vmatprep.subr.bf16.mxu1 %v875_v0  ;;  %85 = vrot.lane.b32.xlu0 %v988_v2, %s878_s23  ;;  %v118_v6 = vld [vmem:[#allocation4 + $0x18] sm:$0xff]  ;;  %v648_v8 = vpack.c.bf16 %v116_v4, %v115_v3  ;;  %v119_v10 = vld [vmem:[#allocation4 + $0x20] sm:$0xff]  ;;  %v120_v11 = vld [vmem:[#allocation4 + $0x28] sm:$0xff]  ;;  %vm94_vm3 = vcmask 523264   ;;  %vm209_vm4 = vcmask 531456   ;;  %vm405_vm5 = vcmask 31744  }
  0x4c   :  { %v992_v7 = vld [vmem:[#allocation2 + $0x8] sm:$0xff]  ;;  %v651_v9 = vpack.c.bf16 %v118_v6, %v117_v5  ;;  %v654_v12 = vpack.c.bf16 %v120_v11, %v119_v10  ;;  %v121_v13 = vld [vmem:[#allocation4 + $0x30] sm:$0xff]  ;;  %v123_v16 = vld [vmem:[#allocation4 + $0x40] sm:$0xff]  ;;  %s885_s27 = smov 64   ;;  %vm574_vm6 = vcmask 293888   ;;  %vm577_vm7 = vcmask 302080  }
  0x4d   :  { %649 = vmatpush3.bf16.msra.mxu0 %v648_v8  ;;  %v122_v14 = vld [vmem:[#allocation4 + $0x38] sm:$0xff]  ;;  %v124_v17 = vld [vmem:[#allocation4 + $0x48] sm:$0xff]  ;;  %v304_v18 = vld [vmem:[#allocation7] sm:$0xff] }
  0x4e   :  { %650 = vmatprep.subr.bf16.mxu0 %v875_v0  ;;  %v657_v15 = vpack.c.bf16 %v122_v14, %v121_v13  ;;  %v305_v19 = vld [vmem:[#allocation7 + $0x8] sm:$0xff]  ;;  %v306_v20 = vld [vmem:[#allocation7 + $0x10] sm:$0xff]  ;;  %v307_v22 = vld [vmem:[#allocation7 + $0x18] sm:$0xff]  ;;  %v660_v23 = vpack.c.bf16 %v124_v17, %v123_v16 }
  0x4f   :  { %87 = vrot.lane.b32.xlu0 %v992_v7, %s878_s23  ;;  %v688_v21 = vpack.c.bf16 %v305_v19, %v304_v18  ;;  %v691_v24 = vpack.c.bf16 %v307_v22, %v306_v20  ;;  %v125_v25 = vld [vmem:[#allocation4 + $0x50] sm:$0xff]  ;;  %v126_v26 = vld [vmem:[#allocation4 + $0x58] sm:$0xff]  ;;  %v127_v28 = vld [vmem:[#allocation4 + $0x60] sm:$0xff] }
  0x50   :  { %v663_v27 = vpack.c.bf16 %v126_v26, %v125_v25  ;;  %v128_v29 = vld [vmem:[#allocation4 + $0x68] sm:$0xff]  ;;  %v129_v31 = vld [vmem:[#allocation4 + $0x70] sm:$0xff]  ;;  %v130_v32 = vld [vmem:[#allocation4 + $0x78] sm:$0xff] }
  0x51   :  { %652 = vmatpush3.bf16.msra.mxu0 %v651_v9  ;;  %689 = vmatpush1.bf16.msra.mxu1 %v688_v21  ;;  %v666_v30 = vpack.c.bf16 %v128_v29, %v127_v28  ;;  %v98_v33 = vld [vmem:[#allocation6 + $0x8] sm:$0xff]  ;;  %v100_v34 = vld [vmem:[#allocation6 + $0x18] sm:$0xff]  ;;  %v669_v35 = vpack.c.bf16 %v130_v32, %v129_v31  ;;  %v97_v37 = vld [vmem:[#allocation6] sm:$0xff] }
  0x52   :  { %653 = vmatprep.subr.bf16.mxu0 %v875_v0  ;;  %690 = vmatprep.subr.bf16.mxu1 %v875_v0  ;;  %v671_v36 = vpack.c.bf16 %v100_v34, %v98_v33  ;;  %v99_v38 = vld [vmem:[#allocation6 + $0x10] sm:$0xff]  ;;  %v102_v39 = vld [vmem:[#allocation6 + $0x28] sm:$0xff]  ;;  %v104_v40 = vld [vmem:[#allocation6 + $0x38] sm:$0xff]  ;;  %v201_v34 = vlaneseq }
  0x53   :  { %v1008_v41 = vld [vmem:[%s1068_s0] sm:$0x3]  ;;  %v673_v42 = vpack.c.bf16 %v99_v38, %v97_v37  ;;  %v675_v43 = vpack.c.bf16 %v104_v40, %v102_v39  ;;  %v101_v44 = vld [vmem:[#allocation6 + $0x20] sm:$0xff]  ;;  %v106_v46 = vld [vmem:[#allocation6 + $0x48] sm:$0xff] }
  0x54   :  { %v103_v45 = vld [vmem:[#allocation6 + $0x30] sm:$0xff]  ;;  %v108_v47 = vld [vmem:[#allocation6 + $0x58] sm:$0xff]  ;;  %v105_v50 = vld [vmem:[#allocation6 + $0x40] sm:$0xff] }
  0x55   :  { %655 = vmatpush3.bf16.msra.mxu0 %v654_v12  ;;  %692 = vmatpush1.bf16.msra.mxu1 %v691_v24  ;;  %v677_v48 = vpack.c.bf16 %v103_v45, %v101_v44  ;;  %v679_v49 = vpack.c.bf16 %v108_v47, %v106_v46  ;;  %v107_v51 = vld [vmem:[#allocation6 + $0x50] sm:$0xff]  ;;  %v110_v52 = vld [vmem:[#allocation6 + $0x68] sm:$0xff]  ;;  %v112_v53 = vld [vmem:[#allocation6 + $0x78] sm:$0xff] }
  0x56   :  { %656 = vmatprep.subr.bf16.mxu0 %v875_v0  ;;  %693 = vmatprep.subr.bf16.mxu1 %v875_v0  ;;  %v681_v54 = vpack.c.bf16 %v107_v51, %v105_v50  ;;  %v683_v55 = vpack.c.bf16 %v112_v53, %v110_v52  ;;  %v109_v56 = vld [vmem:[#allocation6 + $0x60] sm:$0xff]  ;;  %v111_v57 = vld [vmem:[#allocation6 + $0x70] sm:$0xff]  ;;  %v114_v59 = vld [vmem:[#allocation6 + $0x88] sm:$0x1] }
  0x57   :  { %v685_v58 = vpack.c.bf16 %v111_v57, %v109_v56  ;;  %v113_v60 = vld [vmem:[#allocation6 + $0x80] sm:$0x1]  ;;  %v78_v61 = vld [vmem:[%s1069_s1] sm:$0xff]  ;;  %v79_v4 = vld [vmem:[%s1069_s1 + $0x8] sm:$0xff]  ;;  %s884_s1 = smov 96  }
  0x58   :  { %v308_v6 = vld [vmem:[#allocation7 + $0x20] sm:$0xff]  ;;  %v309_v8 = vld [vmem:[#allocation7 + $0x28] sm:$0xff]  ;;  %v310_v9 = vld [vmem:[#allocation7 + $0x30] sm:$0xff] }
  0x59   :  { %658 = vmatpush3.bf16.msra.mxu0 %v657_v15  ;;  %v694_v11 = vpack.c.bf16 %v309_v8, %v308_v6  ;;  %v311_v12 = vld [vmem:[#allocation7 + $0x38] sm:$0xff]  ;;  %v312_v15 = vld [vmem:[#allocation7 + $0x40] sm:$0xff]  ;;  %v313_v16 = vld [vmem:[#allocation7 + $0x48] sm:$0xff] }
  0x5a   :  { %659 = vmatprep.subr.bf16.mxu0 %v875_v0  ;;  %v697_v14 = vpack.c.bf16 %v311_v12, %v310_v9  ;;  %v700_v17 = vpack.c.bf16 %v313_v16, %v312_v15  ;;  %v315_v18 = vld [vmem:[#allocation7 + $0x58] sm:$0xff]  ;;  %v316_v20 = vld [vmem:[#allocation7 + $0x60] sm:$0xff]  ;;  %v317_v21 = vld [vmem:[#allocation7 + $0x68] sm:$0xff]  ;;  %v879_v9 = vmov 3  }
  0x5b   :  { %695 = vmatpush1.bf16.msra.mxu1 %v694_v11  ;;  %v706_v22 = vpack.c.bf16 %v317_v21, %v316_v20  ;;  %v319_v24 = vld [vmem:[#allocation7 + $0x78] sm:$0xff]  ;;  %v320_v26 = vld [vmem:[#allocation7 + $0x80] sm:$0xff]  ;;  %v322_v29 = vld [vmem:[#allocation7 + $0x90] sm:$0xff]  ;;  %738 = vset.pattern.permute.xlu0 %v879_v9 }
  0x5c   :  { %696 = vmatprep.subr.bf16.mxu1 %v875_v0 }
  0x5d   :  { %661 = vmatpush3.bf16.msra.mxu0 %v660_v23  ;;  %v318_v23 = vld [vmem:[#allocation7 + $0x70] sm:$0xff] }
  0x5e   :  { %662 = vmatprep.subr.bf16.mxu0 %v875_v0  ;;  %v709_v25 = vpack.c.bf16 %v319_v24, %v318_v23 }
  0x5f   :  { %698 = vmatpush1.bf16.msra.mxu1 %v697_v14 }
  0x60   :  { %699 = vmatprep.subr.bf16.mxu1 %v875_v0 }
  0x61   :  { %664 = vmatpush3.bf16.msra.mxu0 %v663_v27  ;;  %v321_v27 = vld [vmem:[#allocation7 + $0x88] sm:$0xff] }
  0x62   :  { %665 = vmatprep.subr.bf16.mxu0 %v875_v0  ;;  %v712_v28 = vpack.c.bf16 %v321_v27, %v320_v26  ;;  %v881_v26 = vmov 2   ;;  %v882_v27 = vmov 4  }
  0x63   :  { %701 = vmatpush1.bf16.msra.mxu1 %v700_v17 }
  0x64   :  { %702 = vmatprep.subr.bf16.mxu1 %v875_v0 }
  0x65   :  { %667 = vmatpush3.bf16.msra.mxu0 %v666_v30  ;;  %v323_v30 = vld [vmem:[#allocation7 + $0x98] sm:$0xff] }
  0x66   :  { %668 = vmatprep.subr.bf16.mxu0 %v875_v0  ;;  %v715_v31 = vpack.c.bf16 %v323_v30, %v322_v29 }
  0x69   :  { %670 = vmatpush3.bf16.msra.mxu0 %v669_v35  ;;  %v1028_v35 = vshrl.u32 %v201_v34, 7 }
  0x6a   :  { %672 = vmatprep.subr.bf16.mxu0 %v671_v36 }
  0x6b   :  { %v203_v36 = vsub.s32 0, %v1028_v35  ;;  %v207_v38 = vsub.s32 1, %v1028_v35 }
  0x6c   :  { %645 = vmatmul.mubr.f32.vlgmr.msra.gmra.mrb[0].mxu0 %v1008_v41 }
  0x6d   :  { %674 = vmatpush1.bf16.msra.mxu0 %v673_v42  ;;  %287 = vmatprep.mubr.f32.mxu0 %v877_v1 }
  0x6e   :  { %676 = vmatprep.subr.bf16.mxu0 %v675_v43 }
  0x71   :  { %678 = vmatpush1.bf16.msra.mxu0 %v677_v48 }
  0x72   :  { %680 = vmatprep.subr.bf16.mxu0 %v679_v49 }
  0x75   :  { %682 = vmatpush1.bf16.msra.mxu0 %v681_v54 }
  0x76   :  { %684 = vmatprep.subr.bf16.mxu0 %v683_v55 }
  0x79   :  { %686 = vmatpush1.bf16.msra.mxu0 %v685_v58 }
  0x7a   :  { %589 = vmatprep.subr.msk.mxu0 %vm216_vm1, %v114_v59 }
  0x7d   :  { %590 = vmatpush1.msk.msra.mxu0 %vm216_vm1, %v113_v60 }
  0xbd   :  { %v86_v62 = vpop.permute.xlu0 %85 }
  0xbe   :  { %v92_v63 = vsel %vm91_vm2, %v78_v61, %v86_v62 }
  0xbf   :  { %v95_v3 = vsel %vm94_vm3, %v92_v63, 1.0 }
  0xc0   :  { %591 = vmatmul.mubr.msk.f32.vlgmr.msra.gmra.mrb[2].mxu0 %vm209_vm4, %v95_v3 }
  0xc1   :  { %v88_v5 = vpop.permute.xlu0 %87  ;;  %293 = vmatprep.mubr.f32.mxu0 %v877_v1  ;;  %v314_v1 = vld [vmem:[#allocation7 + $0x50] sm:$0xff] }
  0xc2   :  { %v93_v10 = vsel %vm91_vm2, %v79_v4, %v88_v5  ;;  %v703_v19 = vpack.c.bf16 %v315_v18, %v314_v1 }
  0xc3   :  { %v96_v13 = vsel %vm94_vm3, %v93_v10, 1.0  ;;  %v880_v10 = vmov 1  }
  0xc4   :  { %592 = vmatmul.mubr.msk.f32.gmra.mrb[4].mxu0 %vm209_vm4, %v96_v13  ;;  %704 = vmatpush1.bf16.msra.mxu1 %v703_v19 }
  0xc5   :  { %705 = vmatprep.subr.bf16.mxu1 %v875_v0  ;;  %736 = vset.pattern.permute.xlu1 %v880_v10 }
  0xc8   :  { %707 = vmatpush1.bf16.msra.mxu1 %v706_v22 }
  0xc9   :  { %708 = vmatprep.subr.bf16.mxu1 %v875_v0 }
  0xcc   :  { %710 = vmatpush1.bf16.msra.mxu1 %v709_v25 }
  0xcd   :  { %711 = vmatprep.subr.bf16.mxu1 %v875_v0 }
  0xd0   :  { %713 = vmatpush1.bf16.msra.mxu1 %v712_v28 }
  0xd1   :  { %714 = vmatprep.subr.bf16.mxu1 %v875_v0 }
  0xd4   :  { %716 = vmatpush1.bf16.msra.mxu1 %v715_v31 }
 0x13f   :  { %v197_v32 = vpop.f32.mrb[0].mxu0 }
 0x140   :  { %v646_v33 = vpop.f32.mrb[1].mxu0  ;;  %v204_v37 = vrot.slane %v197_v32, %v203_v36  ;;  %v208_v0 = vrot.slane %v197_v32, %v207_v38 }
 0x193   :  { %v289_v39 = vpop.f32.mrb[2].mxu0 }
 0x194   :  { %v290_v40 = vadd.f32 %v289_v39, %v204_v37  ;;  %v291_v42 = vpop.f32.mrb[3].mxu0  ;;  %v883_v37 = vmov 0  }
 0x195   :  { %745 = vtanh.f32 %v291_v42 }
 0x196   :  { %747 = vtanh.f32 %v290_v40 }
 0x197   :  { %v295_v43 = vpop.f32.mrb[4].mxu0 }
 0x198   :  { %v296_v44 = vadd.f32 %v295_v43, %v208_v0  ;;  %v297_v45 = vpop.f32.mrb[5].mxu0  ;;  %v458_v43 = vrot.slane %v1008_v41, %v203_v36 }
 0x199   :  { %749 = vtanh.f32 %v297_v45 }
 0x19a   :  { %751 = vtanh.f32 %v296_v44 }
 0x19f   :  { %v746_v46 = vpop.eup %745 }
 0x1a0   :  { %v748_v47 = vpop.eup %747  ;;  %593 = vmatprep.mubr.msk.f32.mxu1 %vm91_vm2, %v746_v46 }
 0x1a1   :  { %395 = vmatmul.mubr.f32.vlgmr.msra.gmra.mrb[0].mxu1 %v748_v47 }
 0x1a3   :  { %v750_v48 = vpop.eup %749 }
 0x1a4   :  { %v752_v49 = vpop.eup %751  ;;  %594 = vmatprep.mubr.msk.f32.mxu1 %vm91_vm2, %v750_v48 }
 0x1a5   :  { %400 = vmatmul.mubr.f32.gmra.mrb[2].mxu1 %v752_v49 }
 0x274   :  { %v396_v50 = vpop.f32.mrb[0].mxu1 }
 0x275   :  { %v398_v51 = vpop.f32.mrb[1].mxu1  ;;  %v406_v52 = vsel %vm405_vm5, %v396_v50, -inf }
 0x276   :  { %407 = vmax.xlane.f32.xlu1 %v406_v52 }
 0x278   :  { %v401_v53 = vpop.f32.mrb[2].mxu1 }
 0x279   :  { %v403_v54 = vpop.f32.mrb[3].mxu1  ;;  %v409_v55 = vsel %vm405_vm5, %v401_v53, -inf }
 0x27a   :  { %410 = vmax.xlane.f32.xlu1 %v409_v55 }
 0x303   :  { %v408_v56 = vpop.xlane.xlu1 %407 }
 0x304   :  { %v412_v57 = vsub.f32 %v396_v50, %v408_v56  ;;  %v428_v58 = vmax.f32 %v408_v56, %v396_v50 }
 0x306   :  { %v414_v59 = vmul.f32 1.442695, %v412_v57  ;;  %v430_v60 = vsub.f32 %v396_v50, %v428_v58  ;;  %v436_v61 = vsub.f32 %v408_v56, %v428_v58  ;;  %v499_v50 = vrot.slane %v1008_v41, %v207_v38 }
 0x307   :  { %v411_v62 = vpop.xlane.xlu1 %410 }
 0x308   :  { %753 = vpow2.f32 %v414_v59  ;;  %v413_v63 = vsub.f32 %v401_v53, %v411_v62  ;;  %v438_v11 = vmul.f32 1.442695, %v436_v61  ;;  %v432_v12 = vmul.f32 1.442695, %v430_v60 }
 0x309   :  { %v429_v18 = vmax.f32 %v411_v62, %v401_v53 }
 0x30a   :  { %v416_v3 = vmul.f32 1.442695, %v413_v63 }
 0x30b   :  { %v437_v21 = vsub.f32 %v411_v62, %v429_v18  ;;  %v431_v24 = vsub.f32 %v401_v53, %v429_v18 }
 0x30c   :  { %755 = vpow2.f32 %v416_v3 }
 0x30d   :  { %757 = vpow2.f32 %v438_v11  ;;  %v440_v25 = vmul.f32 1.442695, %v437_v21  ;;  %v434_v29 = vmul.f32 1.442695, %v431_v24 }
 0x30e   :  { %759 = vpow2.f32 %v432_v12 }
 0x312   :  { %v754_v4 = vpop.eup %753 }
 0x313   :  { %v418_v5 = vsel %vm405_vm5, %v754_v4, 0.0 }
 0x314   :  { %419 = vadd.xlane.f32.xlu0 %v418_v5 }
 0x316   :  { %v756_v6 = vpop.eup %755 }
 0x317   :  { %v421_v8 = vsel %vm405_vm5, %v756_v6, 0.0  ;;  %v758_v13 = vpop.eup %757 }
 0x318   :  { %422 = vadd.xlane.f32.xlu1 %v421_v8  ;;  %v760_v16 = vpop.eup %759 }
 0x3a1   :  { %v420_v14 = vpop.xlane.xlu0 %419 }
 0x3a2   :  { %761 = vrcp.f32 %v420_v14  ;;  %v442_v15 = vmul.f32 %v758_v13, %v420_v14 }
 0x3a4   :  { %v444_v17 = vadd.f32 %v760_v16, %v442_v15 }
 0x3a5   :  { %v423_v1 = vpop.xlane.xlu1 %422 }
 0x3a6   :  { %763 = vrcp.f32 %v444_v17 }
 0x3a7   :  { %765 = vrcp.f32 %v423_v1 }
 0x3a8   :  { %767 = vpow2.f32 %v440_v25 }
 0x3a9   :  { %769 = vpow2.f32 %v434_v29 }
 0x3ac   :  { %v762_v19 = vpop.eup %761 }
 0x3ad   :  { %v426_v20 = vmul.f32 %v762_v19, %v754_v4 }
 0x3af   :  { %482 = vperm.xlu0 %738, %v426_v20   ;;  %462 = vperm.xlu1 %736, %v426_v20  }
 0x3b0   :  { %v764_v22 = vpop.eup %763 }
 0x3b1   :  { %v448_v23 = vmul.f32 %v764_v22, %v760_v16  ;;  %v766_v28 = vpop.eup %765 }
 0x3b2   :  { %v427_v30 = vmul.f32 %v766_v28, %v756_v6  ;;  %v768_v31 = vpop.eup %767 }
 0x3b3   :  { %737 = vset.pattern.permute.xlu1 %v881_v26  ;;  %744 = vset.pattern.permute.xlu0 %v882_v27  ;;  %v443_v32 = vmul.f32 %v768_v31, %v423_v1  ;;  %v770_v33 = vpop.eup %769  ;;  %v544_v39 = vsub.f32 1.0, %v448_v23 }
 0x3b4   :  { %472 = vperm.xlu1 %737, %v426_v20  }
 0x3b5   :  { %v445_v34 = vadd.f32 %v770_v33, %v443_v32 }
 0x3b7   :  { %771 = vrcp.f32 %v445_v34 }
 0x3b8   :  { %739 = vset.pattern.permute.xlu1 %v880_v10 }
 0x3b9   :  { %503 = vperm.xlu1 %739, %v427_v30  }
 0x3bd   :  { %740 = vset.pattern.permute.xlu1 %v881_v26 }
 0x3be   :  { %513 = vperm.xlu1 %740, %v427_v30  }
 0x3c1   :  { %v772_v40 = vpop.eup %771 }
 0x3c2   :  { %741 = vset.pattern.permute.xlu1 %v879_v9  ;;  %v449_v42 = vmul.f32 %v772_v40, %v770_v33 }
 0x3c3   :  { %523 = vperm.xlu1 %741, %v427_v30  }
 0x3c4   :  { %v545_v0 = vsub.f32 1.0, %v449_v42 }
 0x3c7   :  { %742 = vset.pattern.permute.xlu1 %v883_v37 }
 0x3c8   :  { %452 = vperm.xlu1 %742, %v426_v20  }
 0x3cc   :  { %493 = vperm.xlu1 %742, %v427_v30  }
 0x3d0   :  { %743 = vset.pattern.permute.xlu1 %v882_v27 }
 0x3d1   :  { %534 = vperm.xlu1 %743, %v448_v23  }
 0x3d5   :  { %548 = vperm.xlu1 %743, %v544_v39  }
 0x3d9   :  { %539 = vperm.xlu1 %743, %v449_v42  }
 0x3dd   :  { %553 = vperm.xlu1 %743, %v545_v0  }
 0x42e   :  { %v483_v44 = vpop.permute.xlu0 %482  ;;  %v463_v45 = vpop.permute.xlu1 %462 }
 0x42f   :  { %v485_v46 = vmul.f32 %v483_v44, %v458_v43  ;;  %v465_v47 = vmul.f32 %v463_v45, %v458_v43 }
 0x431   :  { %487 = vrot.lane.b32.xlu0 %v485_v46, %s878_s23  ;;  %467 = vrot.lane.b32.xlu1 %v465_v47, %s884_s1 }
 0x433   :  { %v473_v48 = vpop.permute.xlu1 %472 }
 0x434   :  { %v475_v49 = vmul.f32 %v473_v48, %v458_v43 }
 0x435   :  { %560 = vrot.lane.b32.xlu0 %v426_v20, %s878_s23 }
 0x436   :  { %477 = vrot.lane.b32.xlu1 %v475_v49, %s885_s27 }
 0x438   :  { %v504_v51 = vpop.permute.xlu1 %503 }
 0x439   :  { %v506_v36 = vmul.f32 %v504_v51, %v499_v50  ;;  %566 = vrot.lane.b32.xlu0 %v448_v23, %s878_s23 }
 0x43b   :  { %508 = vrot.lane.b32.xlu1 %v506_v36, %s884_s1 }
 0x43d   :  { %v514_v52 = vpop.permute.xlu1 %513 }
 0x43e   :  { %v516_v53 = vmul.f32 %v514_v52, %v499_v50 }
 0x440   :  { %518 = vrot.lane.b32.xlu1 %v516_v53, %s885_s27 }
 0x442   :  { %v524_v54 = vpop.permute.xlu1 %523 }
 0x443   :  { %v526_v55 = vmul.f32 %v524_v54, %v499_v50 }
 0x445   :  { %528 = vrot.lane.b32.xlu1 %v526_v55, %s878_s23 }
 0x447   :  { %v453_v41 = vpop.permute.xlu1 %452 }
 0x448   :  { %v459_v60 = vmul.f32 %v458_v43, %v453_v41 }
 0x449   :  { %562 = vrot.lane.b32.xlu1 %v427_v30, %s878_s23 }
 0x44b   :  { %v494_v35 = vpop.permute.xlu1 %493 }
 0x44c   :  { %v500_v13 = vmul.f32 %v499_v50, %v494_v35 }
 0x44d   :  { %568 = vrot.lane.b32.xlu1 %v449_v42, %s878_s23 }
 0x450   :  { %v535_v38 = vpop.permute.xlu1 %534 }
 0x451   :  { %v542_v6 = vmul.f32 %v535_v38, %v988_v2 }
 0x454   :  { %v549_v56 = vpop.permute.xlu1 %548 }
 0x458   :  { %v540_v57 = vpop.permute.xlu1 %539 }
 0x459   :  { %v543_v19 = vmul.f32 %v540_v57, %v992_v7 }
 0x45c   :  { %v554_v58 = vpop.permute.xlu1 %553 }
 0x4a3   :  { %v468_v59 = vpop.permute.xlu1 %467  ;;  %v488_v61 = vpop.permute.xlu0 %487 }
 0x4a4   :  { %v470_v62 = vadd.f32 %v468_v59, %v459_v60 }
 0x4a7   :  { %v561_v4 = vpop.permute.xlu0 %560 }
 0x4a8   :  { %v478_v63 = vpop.permute.xlu1 %477 }
 0x4a9   :  { %v480_v3 = vadd.f32 %v478_v63, %v470_v62 }
 0x4ab   :  { %v490_v5 = vadd.f32 %v488_v61, %v480_v3  ;;  %v567_v11 = vpop.permute.xlu0 %566 }
 0x4ad   :  { %v556_v8 = vmul.f32 %v549_v56, %v490_v5  ;;  %v509_v9 = vpop.permute.xlu1 %508 }
 0x4ae   :  { %v511_v17 = vadd.f32 %v509_v9, %v500_v13 }
 0x4af   :  { %v558_v10 = vadd.f32 %v556_v8, %v542_v6 }
 0x4b1   :  { %v572_v12 = vsel %vm91_vm2, %v558_v10, %v561_v4 }
 0x4b2   :  { %v575_v14 = vsel %vm574_vm6, %v572_v12, %v567_v11  ;;  %v519_v15 = vpop.permute.xlu1 %518 }
 0x4b3   :  { %v578_v16 = vsel %vm577_vm7, %v575_v14, 0.0  ;;  %v521_v2 = vadd.f32 %v519_v15, %v511_v17 }
 0x4b4   :  { %580 = vst [vmem:[%s1074_s6] sm:$0xff] %v578_v16 }
 0x4b7   :  { %v529_v1 = vpop.permute.xlu1 %528 }
 0x4b8   :  { %v531_v18 = vadd.f32 %v529_v1, %v521_v2 }
 0x4ba   :  { %v557_v20 = vmul.f32 %v554_v58, %v531_v18 }
 0x4bb   :  { %v563_v21 = vpop.permute.xlu1 %562 }
 0x4bc   :  { %v559_v22 = vadd.f32 %v557_v20, %v543_v19 }
 0x4be   :  { %v573_v23 = vsel %vm91_vm2, %v559_v22, %v563_v21 }
 0x4bf   :  { %v569_v24 = vpop.permute.xlu1 %568 }
 0x4c0   :  { %v576_v25 = vsel %vm574_vm6, %v573_v23, %v569_v24 }
 0x4c1   :  { %v579_v26 = vsel %vm577_vm7, %v576_v25, 0.0 }
 0x4c2   :  { %581 = vst [vmem:[%s1074_s6 + $0x8] sm:$0xff] %v579_v26 }
 0x4c3   :  { %586 = vsyncpa [#allocation3], 1 }
 0x4c4   :  { %587 = vsyncpa [#allocation5], 1 }
 0x4c5   :  { %588 = vsyncpa [#allocation8], 1 }

</bundles_post_ra>
